<compile_context>
chip_gen: v6e
topology: v6e:2x2x1
jax: 0.10.0
libtpu: 0.0.40
codegen_flags: <defaults>
</compile_context>

<pallas_src>
import functools

import jax
import jax.numpy as jnp
from jax.experimental import pallas as pl
from jax.experimental.pallas import tpu as pltpu


def _round_up(x, m):
    return ((x + m - 1) // m) * m


def _mlm_head_kernel(x_ref, w1_ref, b1_ref, gamma_ref, beta_ref,
                     w2_ref, b2_ref, o_ref):
    # dense: x @ W1 + b1 — native-dtype operands straight into the MXU,
    # f32 accumulation (no explicit f32 upcast of the operands).
    h = jnp.dot(x_ref[...], w1_ref[...], preferred_element_type=jnp.float32)
    h = h + b1_ref[...].astype(jnp.float32)

    # GELU (exact / erf form, matching torch.nn.functional.gelu default). EUP op.
    h = 0.5 * h * (1.0 + jax.lax.erf(h * 0.7071067811865476))

    # LayerNorm over the feature dim in f32: biased variance, eps = 1e-5.
    mean = jnp.mean(h, axis=-1, keepdims=True)
    centered = h - mean
    var = jnp.mean(centered * centered, axis=-1, keepdims=True)
    h = centered * jax.lax.rsqrt(var + 1e-5)
    h = h * gamma_ref[...].astype(jnp.float32) + beta_ref[...].astype(jnp.float32)

    # decoder: h @ W2[:, vocab_tile] + b2[vocab_tile]. Cast the normalized
    # activations down to the weight dtype so bf16 weights hit the fast MXU path.
    out = jnp.dot(h.astype(w2_ref.dtype), w2_ref[...],
                  preferred_element_type=jnp.float32)
    out = out + b2_ref[...].astype(jnp.float32)
    o_ref[...] = out.astype(o_ref.dtype)


@functools.partial(
    jax.jit, static_argnames=("token_tile", "vocab_tile", "vmem_limit_bytes"))
def mlm_head(x, w1, b1, gamma, beta, w2, b2, *,
             token_tile=256, vocab_tile=2048,
             vmem_limit_bytes=48 * 1024 * 1024):
    """x: [batch, seq, d_model] -> logits: [batch, seq, vocab_size]."""
    batch, seq, d_model = x.shape
    vocab = w2.shape[1]
    tokens = batch * seq

    # MXU-friendly tiles (multiples of 128) clamped so tiny inputs don't over-pad.
    tm = min(token_tile, _round_up(tokens, 128))
    tn = min(vocab_tile, _round_up(vocab, 128))
    tokens_p = _round_up(tokens, tm)
    vocab_p = _round_up(vocab, tn)

    x2d = x.reshape(tokens, d_model)
    if tokens_p != tokens:
        # explicit zero-padding so padded rows stay finite through GELU/LN
        x2d = jnp.pad(x2d, ((0, tokens_p - tokens), (0, 0)))
    w2p, b2p = w2, b2
    if vocab_p != vocab:
        w2p = jnp.pad(w2, ((0, 0), (0, vocab_p - vocab)))
        b2p = jnp.pad(b2, ((0, vocab_p - vocab),))

    # biases / LN params as [1, d] rows so they broadcast in-kernel
    b1r = b1.reshape(1, d_model)
    gr = gamma.reshape(1, d_model)
    br = beta.reshape(1, d_model)
    b2r = b2p.reshape(1, vocab_p)

    n_vocab_tiles = vocab_p // tn
    n_token_tiles = tokens_p // tm
    # vocab tiles OUTER, token tiles INNER: the W2 tile's index_map is constant
    # along the inner axis, so it stays resident in VMEM while x streams.
    grid = (n_vocab_tiles, n_token_tiles)

    isz = lambda a: jnp.dtype(a.dtype).itemsize
    cost = pl.CostEstimate(
        flops=(2 * tokens_p * d_model * d_model * n_vocab_tiles
               + 2 * tokens_p * d_model * vocab_p),
        transcendentals=tokens_p * d_model * n_vocab_tiles,
        bytes_accessed=(tokens_p * d_model * isz(x) * n_vocab_tiles
                        + d_model * d_model * isz(w1)
                        + d_model * vocab_p * isz(w2)
                        + tokens_p * vocab_p * isz(x)),
    )

    out2d = pl.pallas_call(
        _mlm_head_kernel,
        out_shape=jax.ShapeDtypeStruct((tokens_p, vocab_p), x.dtype),
        grid_spec=pltpu.PrefetchScalarGridSpec(
            num_scalar_prefetch=0,
            grid=grid,
            in_specs=[
                pl.BlockSpec((tm, d_model), lambda j, i: (i, 0)),       # x (streams)
                pl.BlockSpec((d_model, d_model), lambda j, i: (0, 0)),  # W1 (resident)
                pl.BlockSpec((1, d_model), lambda j, i: (0, 0)),        # b1
                pl.BlockSpec((1, d_model), lambda j, i: (0, 0)),        # gamma
                pl.BlockSpec((1, d_model), lambda j, i: (0, 0)),        # beta
                pl.BlockSpec((d_model, tn), lambda j, i: (0, j)),       # W2 tile (resident over inner axis)
                pl.BlockSpec((1, tn), lambda j, i: (0, j)),             # b2 tile
            ],
            out_specs=pl.BlockSpec((tm, tn), lambda j, i: (i, j)),
        ),
        compiler_params=pltpu.CompilerParams(
            dimension_semantics=("parallel", "arbitrary"),
            vmem_limit_bytes=vmem_limit_bytes),
        cost_estimate=cost,
    )(x2d, w1, b1r, gr, br, w2p, b2r)

    return out2d[:tokens, :vocab].reshape(batch, seq, vocab)


def _reference(x, w1, b1, gamma, beta, w2, b2):
    h = x @ w1 + b1
    h = 0.5 * h * (1.0 + jax.lax.erf(h / jnp.sqrt(2.0)))
    mean = jnp.mean(h, axis=-1, keepdims=True)
    var = jnp.mean((h - mean) ** 2, axis=-1, keepdims=True)
    h = (h - mean) / jnp.sqrt(var + 1e-5)
    h = h * gamma + beta
    return h @ w2 + b2


if __name__ == "__main__":
    key = jax.random.PRNGKey(0)
    # small but MXU-aligned demo shapes; 2 vocab tiles exercise the vocab grid axis
    batch, seq, d_model, vocab_size = 2, 64, 128, 512

    ks = jax.random.split(key, 8)
    x = jax.random.normal(ks[0], (batch, seq, d_model), dtype=jnp.float32)
    # deterministic synthetic parameters (stored as [in, out], PyTorch-transposed)
    w1 = jax.random.normal(ks[1], (d_model, d_model), dtype=jnp.float32) * 0.02
    b1 = jax.random.normal(ks[2], (d_model,), dtype=jnp.float32) * 0.02
    gamma = 1.0 + 0.1 * jax.random.normal(ks[3], (d_model,), dtype=jnp.float32)
    beta = 0.1 * jax.random.normal(ks[4], (d_model,), dtype=jnp.float32)
    w2 = jax.random.normal(ks[5], (d_model, vocab_size), dtype=jnp.float32) * 0.02
    b2 = jax.random.normal(ks[6], (vocab_size,), dtype=jnp.float32) * 0.02

    out = mlm_head(x, w1, b1, gamma, beta, w2, b2,
                   token_tile=128, vocab_tile=256)
    out = jax.block_until_ready(out)

    ref = _reference(x, w1, b1, gamma, beta, w2, b2)
    assert out.shape == (batch, seq, vocab_size), out.shape
    max_err = float(jnp.max(jnp.abs(out - ref)))
    assert jnp.allclose(out, ref, atol=2e-4, rtol=2e-4), max_err

    print("KERNEL_OK")
</pallas_src>

<mosaic_0001>
module attributes {stable_mosaic.version = 11 : i64} {
  func.func @_mlm_head_kernel(%arg0: i32, %arg1: i32, %arg2: memref<128x128xf32, #tpu.memory_space<vmem>>, %arg3: memref<128x128xf32, #tpu.memory_space<vmem>>, %arg4: memref<1x128xf32, #tpu.memory_space<vmem>>, %arg5: memref<1x128xf32, #tpu.memory_space<vmem>>, %arg6: memref<1x128xf32, #tpu.memory_space<vmem>>, %arg7: memref<128x256xf32, #tpu.memory_space<vmem>>, %arg8: memref<1x256xf32, #tpu.memory_space<vmem>>, %arg9: memref<128x256xf32, #tpu.memory_space<vmem>>) attributes {dimension_semantics = [#tpu.dimension_semantics<parallel>, #tpu.dimension_semantics<arbitrary>], iteration_bounds = array<i64: 2, 1>, scalar_prefetch = 0 : i64, scratch_operands = 0 : i64, tpu.core_type = #tpu.core_type<tc>, window_params = [{transform_indices = @transform_0, window_bounds = array<i64: 128, 128>}, {pipeline_mode = #tpu.pipeline_mode<synchronous>, transform_indices = @transform_1, window_bounds = array<i64: 128, 128>}, {pipeline_mode = #tpu.pipeline_mode<synchronous>, transform_indices = @transform_2, window_bounds = array<i64: 1, 128>}, {pipeline_mode = #tpu.pipeline_mode<synchronous>, transform_indices = @transform_3, window_bounds = array<i64: 1, 128>}, {pipeline_mode = #tpu.pipeline_mode<synchronous>, transform_indices = @transform_4, window_bounds = array<i64: 1, 128>}, {transform_indices = @transform_5, window_bounds = array<i64: 128, 256>}, {transform_indices = @transform_6, window_bounds = array<i64: 1, 256>}, {transform_indices = @transform_7, window_bounds = array<i64: 128, 256>}]} {
    %c0 = arith.constant 0 : index
    %c0_0 = arith.constant 0 : index
    %0 = vector.load %arg2[%c0, %c0_0] : memref<128x128xf32, #tpu.memory_space<vmem>>, vector<128x128xf32>
    %c0_1 = arith.constant 0 : index
    %c0_2 = arith.constant 0 : index
    %1 = vector.load %arg3[%c0_1, %c0_2] : memref<128x128xf32, #tpu.memory_space<vmem>>, vector<128x128xf32>
    %cst = arith.constant dense<0.000000e+00> : vector<128x128xf32>
    %2 = tpu.matmul %0, %1, %cst {dimension_numbers = #tpu.dot_dimension_numbers<[1], [0], [0], [1], [0, 0, 1, 1], [], []>} : vector<128x128xf32>, vector<128x128xf32>, vector<128x128xf32> -> vector<128x128xf32>
    %c0_3 = arith.constant 0 : index
    %c0_4 = arith.constant 0 : index
    %3 = vector.load %arg4[%c0_3, %c0_4] : memref<1x128xf32, #tpu.memory_space<vmem>>, vector<1x128xf32>
    %4 = vector.broadcast %3 : vector<1x128xf32> to vector<128x128xf32>
    %5 = arith.addf %2, %4 : vector<128x128xf32>
    %cst_5 = arith.constant 5.000000e-01 : f32
    %6 = vector.broadcast %cst_5 : f32 to vector<128x128xf32>
    %7 = arith.mulf %6, %5 : vector<128x128xf32>
    %cst_6 = arith.constant 0.707106769 : f32
    %8 = vector.broadcast %cst_6 : f32 to vector<128x128xf32>
    %9 = arith.mulf %5, %8 : vector<128x128xf32>
    %10 = math.erf %9 : vector<128x128xf32>
    %cst_7 = arith.constant 1.000000e+00 : f32
    %11 = vector.broadcast %cst_7 : f32 to vector<128x128xf32>
    %12 = arith.addf %11, %10 : vector<128x128xf32>
    %13 = arith.mulf %7, %12 : vector<128x128xf32>
    %cst_8 = arith.constant dense<0.000000e+00> : vector<128xf32>
    %14 = vector.multi_reduction <add>, %13, %cst_8 [1] : vector<128x128xf32> to vector<128xf32>
    %15 = vector.shape_cast %14 : vector<128xf32> to vector<128x1xf32>
    %cst_9 = arith.constant 1.280000e+02 : f32
    %16 = vector.broadcast %cst_9 : f32 to vector<128x1xf32>
    %17 = arith.divf %15, %16 : vector<128x1xf32>
    %18 = vector.broadcast %17 : vector<128x1xf32> to vector<128x128xf32>
    %19 = arith.subf %13, %18 : vector<128x128xf32>
    %20 = arith.mulf %19, %19 : vector<128x128xf32>
    %cst_10 = arith.constant dense<0.000000e+00> : vector<128xf32>
    %21 = vector.multi_reduction <add>, %20, %cst_10 [1] : vector<128x128xf32> to vector<128xf32>
    %22 = vector.shape_cast %21 : vector<128xf32> to vector<128x1xf32>
    %cst_11 = arith.constant 1.280000e+02 : f32
    %23 = vector.broadcast %cst_11 : f32 to vector<128x1xf32>
    %24 = arith.divf %22, %23 : vector<128x1xf32>
    %cst_12 = arith.constant 9.99999974E-6 : f32
    %25 = vector.broadcast %cst_12 : f32 to vector<128x1xf32>
    %26 = arith.addf %24, %25 : vector<128x1xf32>
    %27 = math.rsqrt %26 : vector<128x1xf32>
    %28 = vector.broadcast %27 : vector<128x1xf32> to vector<128x128xf32>
    %29 = arith.mulf %19, %28 : vector<128x128xf32>
    %c0_13 = arith.constant 0 : index
    %c0_14 = arith.constant 0 : index
    %30 = vector.load %arg5[%c0_13, %c0_14] : memref<1x128xf32, #tpu.memory_space<vmem>>, vector<1x128xf32>
    %31 = vector.broadcast %30 : vector<1x128xf32> to vector<128x128xf32>
    %32 = arith.mulf %29, %31 : vector<128x128xf32>
    %c0_15 = arith.constant 0 : index
    %c0_16 = arith.constant 0 : index
    %33 = vector.load %arg6[%c0_15, %c0_16] : memref<1x128xf32, #tpu.memory_space<vmem>>, vector<1x128xf32>
    %34 = vector.broadcast %33 : vector<1x128xf32> to vector<128x128xf32>
    %35 = arith.addf %32, %34 : vector<128x128xf32>
    %c0_17 = arith.constant 0 : index
    %c0_18 = arith.constant 0 : index
    %36 = vector.load %arg7[%c0_17, %c0_18] : memref<128x256xf32, #tpu.memory_space<vmem>>, vector<128x256xf32>
    %cst_19 = arith.constant dense<0.000000e+00> : vector<128x256xf32>
    %37 = tpu.matmul %35, %36, %cst_19 {dimension_numbers = #tpu.dot_dimension_numbers<[1], [0], [0], [1], [0, 0, 1, 1], [], []>} : vector<128x128xf32>, vector<128x256xf32>, vector<128x256xf32> -> vector<128x256xf32>
    %c0_20 = arith.constant 0 : index
    %c0_21 = arith.constant 0 : index
    %38 = vector.load %arg8[%c0_20, %c0_21] : memref<1x256xf32, #tpu.memory_space<vmem>>, vector<1x256xf32>
    %39 = vector.broadcast %38 : vector<1x256xf32> to vector<128x256xf32>
    %40 = arith.addf %37, %39 : vector<128x256xf32>
    %c0_22 = arith.constant 0 : index
    %c0_23 = arith.constant 0 : index
    %41 = vector.load %arg9[%c0_22, %c0_23] : memref<128x256xf32, #tpu.memory_space<vmem>>, vector<128x256xf32>
    tpu.vector_store %arg9[%c0_22, %c0_23], %40 {strides = array<i32>} : memref<128x256xf32, #tpu.memory_space<vmem>>, vector<128x256xf32>,
    return
  }
  func.func @transform_0(%arg0: i32, %arg1: i32) -> (i32, i32) {
    %c0_i32 = arith.constant 0 : i32
    %c0_i32_0 = arith.constant 0 : i32
    return %arg1, %c0_i32 : i32, i32
  }
  func.func @transform_1(%arg0: i32, %arg1: i32) -> (i32, i32) {
    %c0_i32 = arith.constant 0 : i32
    %c0_i32_0 = arith.constant 0 : i32
    %c0_i32_1 = arith.constant 0 : i32
    return %c0_i32, %c0_i32_0 : i32, i32
  }
  func.func @transform_2(%arg0: i32, %arg1: i32) -> (i32, i32) {
    %c0_i32 = arith.constant 0 : i32
    %c0_i32_0 = arith.constant 0 : i32
    %c0_i32_1 = arith.constant 0 : i32
    return %c0_i32, %c0_i32_0 : i32, i32
  }
  func.func @transform_3(%arg0: i32, %arg1: i32) -> (i32, i32) {
    %c0_i32 = arith.constant 0 : i32
    %c0_i32_0 = arith.constant 0 : i32
    %c0_i32_1 = arith.constant 0 : i32
    return %c0_i32, %c0_i32_0 : i32, i32
  }
  func.func @transform_4(%arg0: i32, %arg1: i32) -> (i32, i32) {
    %c0_i32 = arith.constant 0 : i32
    %c0_i32_0 = arith.constant 0 : i32
    %c0_i32_1 = arith.constant 0 : i32
    return %c0_i32, %c0_i32_0 : i32, i32
  }
  func.func @transform_5(%arg0: i32, %arg1: i32) -> (i32, i32) {
    %c0_i32 = arith.constant 0 : i32
    %c0_i32_0 = arith.constant 0 : i32
    return %c0_i32, %arg0 : i32, i32
  }
  func.func @transform_6(%arg0: i32, %arg1: i32) -> (i32, i32) {
    %c0_i32 = arith.constant 0 : i32
    %c0_i32_0 = arith.constant 0 : i32
    return %c0_i32, %arg0 : i32, i32
  }
  func.func @transform_7(%arg0: i32, %arg1: i32) -> (i32, i32) {
    %c0_i32 = arith.constant 0 : i32
    return %arg1, %arg0 : i32, i32
  }
}

</mosaic_0001>

<bundles_post_ra>
// kernel: mlm_head.1
= control target key start
LH: loop header
LB: loop body
LE: loop exit
PB: predicated region body
PF: predicated region fallthrough
CT: control target
= control target key end

     0   :  { %s2325_s0 = inlined_call_operand.hbm [shape: f32[128,128], index: 0, kind: input, shape index: {}]   ;;  %s2326_s1 = inlined_call_operand.hbm [shape: f32[128,128], index: 1, kind: input, shape index: {}]   ;;  %s2327_s2 = inlined_call_operand.vmem [shape: f32[1,128], index: 2, kind: input, shape index: {}]   ;;  %s2328_s3 = inlined_call_operand.vmem [shape: f32[1,128], index: 3, kind: input, shape index: {}]   ;;  %s2329_s4 = inlined_call_operand.vmem [shape: f32[1,128], index: 4, kind: input, shape index: {}]   ;;  %s2330_s5 = inlined_call_operand.hbm [shape: f32[128,512], index: 5, kind: input, shape index: {}]   ;;  %s2331_s6 = inlined_call_operand.vmem [shape: f32[1,512], index: 6, kind: input, shape index: {}]   ;;  %s2332_s7 = inlined_call_operand.hbm [shape: f32[128,512], index: 7, kind: output, shape index: {}]  }
   0x1   :  { %2340 = sst [smem:[#allocation16_spill]] %s2325_s0 }
   0x2   :  { %2341 = sst [smem:[#allocation17_spill]] %s2326_s1 }
   0x3   :  { %12 = vsyncpa [#allocation3], 0 }
   0x4   :  { %13 = vsyncpa [#allocation6], 0 }
   0x5   :  { %14 = vsyncpa [#allocation4], 0 }
   0x6   :  { %16 = vsyncpa [#allocation4 + $0x1], 0  ;;  %s1748_s24 = smov 0   ;;  %s1750_s25 = smov 0  }
   0x7   :  { %s1752_s26 = smov 0   ;;  %s1754_s27 = smov 0  }
   0x8   :  { %s1756_s28 = smov 0   ;;  %s1758_s29 = smov 0  }
   0x9 LB: > { %2342 = sst [smem:[#allocation13_spill]] %s1673_s24  ;;  %s1779_s30 = sadd.s32 4294967295, %s1693_s29   ;;  %s1693_s29 = sphi %s1758_s29, %s22_s29   ;;  %s1689_s28 = sphi %s1756_s28, %s2370_s28   ;;  %s1685_s27 = sphi %s1754_s27, %s2369_s27   ;;  %s1681_s26 = sphi %s1752_s26, %s2368_s26   ;;  %s1677_s25 = sphi %s1750_s25, %s2367_s25   ;;  %s1673_s24 = sphi %s1748_s24, %s2366_s24  }
   0xa   : > { %2343 = sst [smem:[#allocation14_spill]] %s1693_s29  ;;  %s1225_s8 = sadd.s32 4294967294, %s1693_s29  }
   0xb   : > { %p158_p0 = scmp.ne.s32.totalorder %s1681_s26, %s1677_s25  ;;  %p159_p1 = scmp.eq.s32.totalorder %s1693_s29, 0 }
   0xc   : > { %p164_p2 = scmp.ne.s32.totalorder %s1677_s25, %s1673_s24  ;;  %p2333_p3 = scmp.eq.s32.totalorder %s1779_s30, 0 }
   0xd   : > { %p216_p4 = scmp.eq.s32.totalorder %s1779_s30, 1  ;;  %p1790_p5 = por %p159_p1, %p158_p0 }
   0xe   : > { %p222_p6 = scmp.eq.s32.totalorder %s1225_s8, 1  ;;  %p1796_p7 = por %p2333_p3, %p164_p2 }
   0xf   : > { %p1800_p8 = por %p216_p4, %p158_p0  ;;  %p1226_p10 = scmp.ge.s32.totalorder %s1693_s29, 1 }
  0x10   : > { %s2345_s11 = scalar_select %p1796_p7, 1, 0 }
  0x11   : > { %s2346_s12 = scalar_select %p1800_p8, 1, 0 }
  0x12   : > { %p1804_p9 = por %p222_p6, %p164_p2  ;;  %p229_p11 = scmp.lt.s32.totalorder %s1693_s29, 3 }
  0x13   : > { %s1695_s15 = smov [#allocation2]   ;;  %p1398_p1 = scmp.lt.s32.totalorder %s1693_s29, 2 }
  0x14   : > { %s2347_s13 = scalar_select %p1804_p9, 1, 0 }
  0x15   : > { %p1810_p12 = pnand %p1226_p10, %p229_p11  ;;  %s244_s16 = sshll.u32 %s1695_s15, 4  ;;  %s245_s16 = int_to_ptr.vmem [resolvable:$true] %s244_s16 }
  0x16   : > { %2348 = sst [smem:[#allocation15_spill]] %s2347_s13  ;;  %s1696_s18 = smov [#allocation5]  }
  0x17   : > { %p1381_p13 = pneg %p1810_p12  ;;  %s257_s19 = sshll.u32 %s1696_s18, 4  ;;  %s258_s19 = int_to_ptr.vmem [resolvable:$true] %s257_s19 }
  0x18   : > { %p1826_p2 = pnand %p1398_p1, %p1790_p5  ;;  %s1536_s21 = scalar_lea.vmem %s245_s16, 2048 }
  0x19   : > { %p1820_p4 = pnand %p1381_p13, %p2333_p3  ;;  %p1537_p10 = scmp.ne.s32.totalorder %s245_s16, %s1536_s21 }
  0x1a   : > { %p1544_p0 = scmp.lt.s32.totalorder %s245_s16, %s245_s16  ;;  %p1545_p3 = scmp.lt.s32.totalorder %s1536_s21, %s1536_s21 }
  0x1b   : > { %p1527_p6 = pneg %p1820_p4 }
  0x1c   : > { %p1546_p9 = por %p1545_p3, %p1544_p0 }
  0x1d   : > { %p1539_p11 = pnand %p1537_p10, %p1527_p6 }
  0x1f   : > { %p1540_p13 = pneg %p1539_p11 }
  0x21   : > { %p1547_p8 = pnand %p1546_p9, %p1540_p13 }
  0x23   : > { %1550 = shalt.err (!%p1547_p8)
}
  0x24   : > { %s1697_s22 = smov 128   ;;  %s1698_s23 = smov 8  }
  0x25   : > { %s2352_s0 = sld [smem:[#allocation16_spill]]  ;;  %s1562_s15 = scalar_lea.vmem %s258_s19, 2048 }
  0x26   : > { %p1563_p5 = scmp.ne.s32.totalorder %s258_s19, %s1562_s15  ;;  %p1570_p11 = scmp.lt.s32.totalorder %s258_s19, %s258_s19 }
  0x27   : > { %p1571_p7 = scmp.lt.s32.totalorder %s1562_s15, %s1562_s15 }
  0x28   : > { %p1565_p1 = pnand %p1563_p5, %p1527_p6 }
  0x29   : > { %p1572_p3 = por %p1571_p7, %p1570_p11 }
  0x2a   : > { %p1566_p10 = pneg %p1565_p1 }
  0x2b   : > { %1384 = dma.hbm_to_vmem [thread:$0]  (!%p1820_p4), %s2352_s0, 2048, %s245_s16, [#allocation3], %s1697_s22, %s1697_s22, %s1698_s23  }
  0x2c   : > { %p1573_p9 = pnand %p1572_p3, %p1566_p10 }
  0x2e   : > { %1576 = shalt.err (!%p1573_p9)
}
  0x2f   : > { %s2353_s1 = sld [smem:[#allocation17_spill]]  ;;  %s34_s16 = sadd.s32 1, %s1689_s28 }
  0x30   : > { %s280_s8 = sand.u32 1, %s1693_s29   ;;  %p36_p8 = scmp.ge.s32.totalorder %s34_s16, 2 }
  0x31   : > { %s282_s10 = sand.u32 1, %s1681_s26   ;;  %s1247_s15 = sshll.u32 %s1689_s28, 8 }
  0x32   : > { %s2372_s16 = smov (%p36_p8, %s34_s16), 0  ;;  %s1230_s17 = sshll.u32 %s282_s10, 8 }
  0x33   : > { %s1857_s21 = scalar_lea.hbm %s2330_s5, %s1247_s15  ;;  %s148_s0 = ssub.s32 %s1689_s28, %s2372_s16 }
  0x34   : > { %p149_p7 = scmp.eq.s32.totalorder %s148_s0, 0  ;;  %s284_s13 = scalar_lea.vmem [#allocation7], %s1230_s17 }
  0x35   : > { %1387 = dma.hbm_to_vmem [thread:$0]  (!%p1820_p4), %s2353_s1, 2048, %s258_s19, [#allocation6], %s1697_s22, %s1697_s22, %s1698_s23  }
  0x36   : > { %s291_s24 = sshll.u32 %s284_s13, 4  ;;  %s2354_s19 = sadd.s32 1, %s1681_s26  ;;  %s292_s24 = int_to_ptr.vmem [resolvable:$true] %s291_s24 }
  0x37   : > { %s1864_s22 = scalar_select %p149_p7, %s1681_s26, %s2354_s19  }
  0x38   : > { %s281_s23 = scalar_lea.sflag [#allocation3], %s280_s8  ;;  %p1579_p0 = pneg %p1826_p2 }
  0x39   : > { %s1590_s1 = scalar_lea.vmem %s292_s24, 4096  ;;  %s1699_s10 = smov [#allocation7]  }
  0x3a   : > { %p1591_p4 = scmp.ne.s32.totalorder %s292_s24, %s1590_s1  ;;  %s1595_s29 = sshll.u32 %s1699_s10, 4  ;;  %s1596_s29 = int_to_ptr.vmem [resolvable:$false] %s1595_s29 }
  0x3b   : > { %s1597_s9 = scalar_lea.vmem %s1596_s29, 8192  ;;  %p1598_p5 = scmp.lt.s32.totalorder %s292_s24, %s1596_s29 }
  0x3c   : > { %p1593_p6 = pnand %p1591_p4, %p1579_p0  ;;  %p1599_p1 = scmp.lt.s32.totalorder %s1597_s9, %s1590_s1 }
  0x3e   : > { %p1594_p13 = pneg %p1593_p6  ;;  %p1600_p10 = por %p1599_p1, %p1598_p5 }
  0x40   : > { %p1601_p11 = pnand %p1600_p10, %p1594_p13 }
  0x42   : > { %1604 = shalt.err (!%p1601_p11)
}
  0x43   : > { %s1700_s0 = smov 512   ;;  %s1701_s13 = smov 256  }
  0x44   : > { %s1702_s8 = smov 16   ;;  %311 = sbr.rel (%p1810_p12) target bundleno = 902 (0x386), region = 48 }
  0x45   : > { %1391 = dma.hbm_to_vmem [thread:$0]  (!%p1826_p2), %s1857_s21, 4096, %s292_s24, %s281_s23, %s1700_s0, %s1701_s13, %s1702_s8  }
  0x46   : > { %p2355_p3 = scmp.eq.s32.totalorder (!%p1810_p12), %s1779_s30, 0 }
  0x49   : > { %1656 = dma.done.wait (%p2355_p3), [#allocation3], 2048   ;;  %p2356_p9 = pmov %p2355_p3 }
  0x4a   : > { %p2357_p8 = pmov %p2355_p3 }
  0x4b   : > { %1658 = vsyncadd (%p2356_p9), [#allocation3], 4294965248 }
  0x4c   : > { %1660 = dma.done.wait (%p2357_p8), [#allocation6], 2048   ;;  %p2358_p7 = pmov %p2355_p3 }
  0x4d   : > { %s321_s1 = sand.u32 1, %s1779_s30   ;;  %s323_s24 = sand.u32 1, %s1677_s25  }
  0x4e   : > { %1662 = vsyncadd (%p2358_p7), [#allocation6], 4294965248  ;;  %s1885_s29 = sshll.u32 %s323_s24, 8  ;;  %s322_s14 = scalar_lea.sflag [#allocation3], %s321_s1 }
  0x4f   : > { %s1888_s20 = scalar_lea.vmem [#allocation7], %s1885_s29  ;;  %p2359_p12 = scmp.ne.s32.totalorder %s2345_s11, 0 }
  0x51   : > { %1664 = dma.done.wait (%p2359_p12), %s322_s14, 4096  }
  0x52   : > { %1666 = vsyncadd (%p2359_p12), %s322_s14, 4294963200  ;;  %v400_v0 = vld [vmem:[#allocation5 + $0x78] sm:$0xff]  ;;  %v399_v1 = vld [vmem:[#allocation5 + $0x70] sm:$0xff]  ;;  %s1238_s19 = sshll.u32 %s1685_s27, 1  ;;  %s2203_s0 = scalar_lea.vmem [#allocation8], %s1885_s29 }
  0x53   : > { %1281 = vmatprep.subr.mxu0 %v400_v0  ;;  %v398_v2 = vld [vmem:[#allocation5 + $0x68] sm:$0xff]  ;;  %v397_v3 = vld [vmem:[#allocation5 + $0x60] sm:$0xff]  ;;  %v396_v5 = vld [vmem:[#allocation5 + $0x58] sm:$0xff]  ;;  %p363_p2 = scmp.lt.s32.totalorder %s1238_s19, 3  ;;  %s1248_s13 = sshll.u32 %s1685_s27, 8 }
  0x54   : > { %1282 = vmatpush3.msra.mxu0 %v400_v0  ;;  %v369_v4 = vld [vmem:[#allocation2] sm:$0xff]  ;;  %v395_v6 = vld [vmem:[#allocation5 + $0x50] sm:$0xff]  ;;  %v394_v7 = vld [vmem:[#allocation5 + $0x48] sm:$0xff]  ;;  %s1110_s8 = sshll.u32 %s2203_s0, 4  ;;  %s2270_s14 = scalar_lea.hbm %s2332_s7, %s1248_s13  ;;  %s2272_s8 = int_to_ptr.vmem [resolvable:$true] %s1110_s8 }
  0x55   : > { %1283 = vmatprep.subr.mxu0 %v399_v1  ;;  %1313 = vmatprep.mubr.f32.mxu0 %v369_v4  ;;  %v393_v8 = vld [vmem:[#allocation5 + $0x40] sm:$0xff]  ;;  %v392_v9 = vld [vmem:[#allocation5 + $0x38] sm:$0xff]  ;;  %v391_v10 = vld [vmem:[#allocation5 + $0x30] sm:$0xff]  ;;  %s2374_s19 = smov (!%p363_p2, %s1238_s19), 3  ;;  %s2279_s27 = scalar_lea.sflag [#allocation4], %s323_s24 }
  0x56   : > { %1284 = vmatpush3.msra.mxu0 %v399_v1  ;;  %v390_v11 = vld [vmem:[#allocation5 + $0x28] sm:$0xff]  ;;  %v389_v12 = vld [vmem:[#allocation5 + $0x20] sm:$0xff]  ;;  %v388_v13 = vld [vmem:[#allocation5 + $0x18] sm:$0xff]  ;;  %s365_s9 = scalar_lea.vmem %s2331_s6, %s2374_s19  ;;  %p2360_p4 = scmp.ne.s32.totalorder %s2346_s12, 0 }
  0x57   : > { %1285 = vmatprep.subr.mxu0 %v398_v2  ;;  %v387_v14 = vld [vmem:[#allocation5 + $0x10] sm:$0xff]  ;;  %v386_v15 = vld [vmem:[#allocation5 + $0x8] sm:$0xff]  ;;  %v385_v16 = vld [vmem:[#allocation5] sm:$0xff]  ;;  %s1704_s30 = smov [#allocation8]  }
  0x58   : > { %1286 = vmatpush3.msra.mxu0 %v398_v2  ;;  %v370_v17 = vld [vmem:[#allocation2 + $0x8] sm:$0xff]  ;;  %v371_v18 = vld [vmem:[#allocation2 + $0x10] sm:$0xff]  ;;  %v372_v19 = vld [vmem:[#allocation2 + $0x18] sm:$0xff]  ;;  %s1609_s11 = sshll.u32 %s1704_s30, 4  ;;  %s1610_s11 = int_to_ptr.vmem [resolvable:$false] %s1609_s11 }
  0x59   : > { %1287 = vmatprep.subr.mxu0 %v397_v3  ;;  %v373_v20 = vld [vmem:[#allocation2 + $0x20] sm:$0xff]  ;;  %v374_v21 = vld [vmem:[#allocation2 + $0x28] sm:$0xff]  ;;  %v375_v22 = vld [vmem:[#allocation2 + $0x30] sm:$0xff]  ;;  %s1611_s15 = scalar_lea.vmem %s1610_s11, 8192  ;;  %p1612_p5 = scmp.lt.s32.totalorder %s2272_s8, %s1610_s11 }
  0x5a   : > { %1288 = vmatpush3.msra.mxu0 %v397_v3  ;;  %v376_v23 = vld [vmem:[#allocation2 + $0x38] sm:$0xff]  ;;  %v377_v24 = vld [vmem:[#allocation2 + $0x40] sm:$0xff]  ;;  %v378_v25 = vld [vmem:[#allocation2 + $0x48] sm:$0xff] }
  0x5b   : > { %1289 = vmatprep.subr.mxu0 %v396_v5  ;;  %v379_v26 = vld [vmem:[#allocation2 + $0x50] sm:$0xff]  ;;  %v380_v27 = vld [vmem:[#allocation2 + $0x58] sm:$0xff]  ;;  %v381_v28 = vld [vmem:[#allocation2 + $0x60] sm:$0xff] }
  0x5c   : > { %1290 = vmatpush3.msra.mxu0 %v396_v5  ;;  %v382_v29 = vld [vmem:[#allocation2 + $0x68] sm:$0xff]  ;;  %v383_v30 = vld [vmem:[#allocation2 + $0x70] sm:$0xff]  ;;  %v384_v31 = vld [vmem:[#allocation2 + $0x78] sm:$0xff] }
  0x5d   : > { %1291 = vmatprep.subr.mxu0 %v395_v6  ;;  %v1897_v36 = vld [vmem:[%s2327_s2] ss:$0 sm:$0xff] }
  0x5e   : > { %1292 = vmatpush3.msra.mxu0 %v395_v6 }
  0x5f   : > { %1293 = vmatprep.subr.mxu0 %v394_v7 }
  0x60   : > { %1294 = vmatpush3.msra.mxu0 %v394_v7 }
  0x61   : > { %1295 = vmatprep.subr.mxu0 %v393_v8 }
  0x62   : > { %1296 = vmatpush3.msra.mxu0 %v393_v8 }
  0x63   : > { %1297 = vmatprep.subr.mxu0 %v392_v9 }
  0x64   : > { %1298 = vmatpush3.msra.mxu0 %v392_v9 }
  0x65   : > { %1299 = vmatprep.subr.mxu0 %v391_v10 }
  0x66   : > { %1300 = vmatpush3.msra.mxu0 %v391_v10 }
  0x67   : > { %1301 = vmatprep.subr.mxu0 %v390_v11 }
  0x68   : > { %1302 = vmatpush3.msra.mxu0 %v390_v11 }
  0x69   : > { %1303 = vmatprep.subr.mxu0 %v389_v12 }
  0x6a   : > { %1304 = vmatpush3.msra.mxu0 %v389_v12 }
  0x6b   : > { %1305 = vmatprep.subr.mxu0 %v388_v13 }
  0x6c   : > { %1306 = vmatpush3.msra.mxu0 %v388_v13 }
  0x6d   : > { %1307 = vmatprep.subr.mxu0 %v387_v14 }
  0x6e   : > { %1308 = vmatpush3.msra.mxu0 %v387_v14 }
  0x6f   : > { %1309 = vmatprep.subr.mxu0 %v386_v15 }
  0x70   : > { %1310 = vmatpush3.msra.mxu0 %v386_v15 }
  0x71   : > { %1311 = vmatprep.subr.mxu0 %v385_v16 }
  0x72   : > { %1312 = vmatpush3.msra.mxu0 %v385_v16 }
  0x73   : > { %1314 = vmatmul.mubr.f32.vlgmr.msra.gmra.mxu0 %v370_v17 }
  0x74   : > { %1316 = vmatprep.mubr.f32.mxu0 %v371_v18 }
  0x77   : > { %1317 = vmatmul.mubr.f32.gmra.mxu0 %v372_v19 }
  0x78   : > { %1319 = vmatprep.mubr.f32.mxu0 %v373_v20 }
  0x7b   : > { %1320 = vmatmul.mubr.f32.gmra.mxu0 %v374_v21 }
  0x7c   : > { %1322 = vmatprep.mubr.f32.mxu0 %v375_v22 }
  0x7f   : > { %1323 = vmatmul.mubr.f32.gmra.mxu0 %v376_v23 }
  0x80   : > { %1325 = vmatprep.mubr.f32.mxu0 %v377_v24 }
  0x83   : > { %1326 = vmatmul.mubr.f32.gmra.mxu0 %v378_v25 }
  0x84   : > { %1328 = vmatprep.mubr.f32.mxu0 %v379_v26 }
  0x87   : > { %1329 = vmatmul.mubr.f32.gmra.mxu0 %v380_v27 }
  0x88   : > { %1331 = vmatprep.mubr.f32.mxu0 %v381_v28 }
  0x8b   : > { %1332 = vmatmul.mubr.f32.gmra.mxu0 %v382_v29 }
  0x8c   : > { %1334 = vmatprep.mubr.f32.mxu0 %v383_v30 }
  0x8f   : > { %1335 = vmatmul.mubr.f32.gmra.mxu0 %v384_v31 }
 0x133   : > { %v1315_v32 = vpop.f32.mrf.mxu0 }
 0x134   : > { %v1918_v58 = vadd.f32 %v1315_v32, %v1897_v36 }
 0x135   : > { %v474_v33 = vpop.f32.mrf.mxu0 }
 0x136   : > { %v1912_v54 = vadd.f32 %v1897_v36, %v474_v33  ;;  %v570_v1 = vmul.f32 0.70710677, %v1918_v58 }
 0x137   : > { %v1318_v34 = vpop.f32.mrf.mxu0 }
 0x138   : > { %v569_v62 = vmul.f32 0.70710677, %v1912_v54  ;;  %v1939_v17 = vadd.f32 %v1318_v34, %v1897_v36 }
 0x139   : > { %v484_v35 = vpop.f32.mrf.mxu0 }
 0x13a   : > { %v1931_v6 = vadd.f32 %v1897_v36, %v484_v35  ;;  %v572_v30 = vmul.f32 0.70710677, %v1939_v17 }
 0x13b   : > { %v1321_v37 = vpop.f32.mrf.mxu0 }
 0x13c   : > { %v500_v38 = vadd.f32 %v1321_v37, %v1897_v36  ;;  %v571_v18 = vmul.f32 0.70710677, %v1931_v6 }
 0x13d   : > { %v494_v39 = vpop.f32.mrf.mxu0 }
 0x13e   : > { %v495_v40 = vadd.f32 %v1897_v36, %v494_v39  ;;  %v574_v41 = vmul.f32 0.70710677, %v500_v38  ;;  %v558_v23 = vmul.f32 0.5, %v500_v38 }
 0x13f   : > { %v1324_v42 = vpop.f32.mrf.mxu0 }
 0x140   : > { %v573_v43 = vmul.f32 0.70710677, %v495_v40  ;;  %v1902_v44 = vadd.f32 %v1324_v42, %v1897_v36  ;;  %v557_v10 = vmul.f32 0.5, %v495_v40 }
 0x141   : > { %v504_v45 = vpop.f32.mrf.mxu0 }
 0x142   : > { %1461 = verf.f32 %v573_v43  ;;  %v576_v46 = vmul.f32 0.70710677, %v1902_v44  ;;  %v505_v47 = vadd.f32 %v1897_v36, %v504_v45  ;;  %v560_v32 = vmul.f32 0.5, %v1902_v44 }
 0x143   : > { %1463 = verf.f32 %v574_v41  ;;  %v1327_v48 = vpop.f32.mrf.mxu0 }
 0x144   : > { %v575_v49 = vmul.f32 0.70710677, %v505_v47  ;;  %v1907_v50 = vadd.f32 %v1327_v48, %v1897_v36  ;;  %1465 = verf.f32 %v576_v46  ;;  %v559_v21 = vmul.f32 0.5, %v505_v47 }
 0x145   : > { %v514_v51 = vpop.f32.mrf.mxu0 }
 0x146   : > { %1467 = verf.f32 %v575_v49  ;;  %v578_v52 = vmul.f32 0.70710677, %v1907_v50  ;;  %v515_v53 = vadd.f32 %v1897_v36, %v514_v51  ;;  %v562_v42 = vmul.f32 0.5, %v1907_v50 }
 0x147   : > { %v1330_v55 = vpop.f32.mrf.mxu0  ;;  %v553_v50 = vmul.f32 0.5, %v1912_v54 }
 0x148   : > { %v577_v56 = vmul.f32 0.70710677, %v515_v53  ;;  %v1915_v57 = vadd.f32 %v1330_v55, %v1897_v36  ;;  %1469 = verf.f32 %v578_v52  ;;  %v561_v33 = vmul.f32 0.5, %v515_v53 }
 0x149   : > { %v524_v59 = vpop.f32.mrf.mxu0 }
 0x14a   : > { %1471 = verf.f32 %v577_v56  ;;  %v580_v60 = vmul.f32 0.70710677, %v1915_v57  ;;  %v525_v61 = vadd.f32 %v1897_v36, %v524_v59  ;;  %v564_v52 = vmul.f32 0.5, %v1915_v57 }
 0x14b   : > { %v1333_v63 = vpop.f32.mrf.mxu0  ;;  %v554_v57 = vmul.f32 0.5, %v1918_v58 }
 0x14c   : > { %v579_v0 = vmul.f32 0.70710677, %v525_v61  ;;  %1473 = verf.f32 %v580_v60  ;;  %v1925_v3 = vadd.f32 %v1333_v63, %v1897_v36  ;;  %v563_v43 = vmul.f32 0.5, %v525_v61 }
 0x14d   : > { %v534_v2 = vpop.f32.mrf.mxu0 }
 0x14e   : > { %1475 = verf.f32 %v579_v0  ;;  %v1928_v4 = vadd.f32 %v1897_v36, %v534_v2  ;;  %v582_v14 = vmul.f32 0.70710677, %v1925_v3  ;;  %v566_v54 = vmul.f32 0.5, %v1925_v3 }
 0x14f   : > { %v1462_v5 = vpop.eup %1461  ;;  %1477 = verf.f32 %v569_v62  ;;  %v1336_v7 = vpop.f32.mrf.mxu0 }
 0x150   : > { %v1464_v8 = vpop.eup %1463  ;;  %v581_v9 = vmul.f32 0.70710677, %v1928_v4  ;;  %1479 = verf.f32 %v570_v1  ;;  %v605_v12 = vadd.f32 1.0, %v1462_v5  ;;  %v1945_v24 = vadd.f32 %v1336_v7, %v1897_v36 }
 0x151   : > { %v544_v11 = vpop.f32.mrf.mxu0  ;;  %v1466_v13 = vpop.eup %1465  ;;  %v606_v20 = vadd.f32 1.0, %v1464_v8  ;;  %v565_v62 = vmul.f32 0.5, %v1928_v4  ;;  %v555_v4 = vmul.f32 0.5, %v1931_v6 }
 0x152   : > { %1481 = verf.f32 %v581_v9  ;;  %v1936_v15 = vadd.f32 %v1897_v36, %v544_v11  ;;  %v1942_v19 = vmul.f32 %v605_v12, %v557_v10  ;;  %v608_v28 = vadd.f32 1.0, %v1466_v13 }
 0x153   : > { %v1468_v16 = vpop.eup %1467  ;;  %1483 = verf.f32 %v582_v14  ;;  %v1952_v31 = vmul.f32 %v606_v20, %v558_v23  ;;  %v584_v35 = vmul.f32 0.70710677, %v1945_v24  ;;  %v556_v12 = vmul.f32 0.5, %v1939_v17  ;;  %v887_v17 = vld [vmem:[%s1888_s20 + $0xf8] sm:$0xff]  ;;  %v885_v20 = vld [vmem:[%s1888_s20 + $0xe8] sm:$0xff]  ;;  %v882_v23 = vld [vmem:[%s1888_s20 + $0xd0] sm:$0xff] }
 0x154   : > { %v607_v22 = vadd.f32 1.0, %v1468_v16  ;;  %641 = vadd.xlane.f32.xlu0 %v1942_v19  ;;  %v583_v26 = vmul.f32 0.70710677, %v1936_v15  ;;  %1485 = verf.f32 %v571_v18  ;;  %v1958_v37 = vmul.f32 %v608_v28, %v560_v32  ;;  %v886_v18 = vld [vmem:[%s1888_s20 + $0xf0] sm:$0xff]  ;;  %1337 = vmatprep.subr.mxu1 %v887_v17 }
 0x155   : > { %v1470_v25 = vpop.eup %1469  ;;  %v567_v58 = vmul.f32 0.5, %v1936_v15  ;;  %v568_v6 = vmul.f32 0.5, %v1945_v24  ;;  %900 = vmatprep.subr.mxu0 %v887_v17  ;;  %1353 = vmatpush1.msra.mxu1 %v886_v18  ;;  %v881_v24 = vld [vmem:[%s1888_s20 + $0xc8] sm:$0xff] }
 0x156   : > { %v1949_v27 = vmul.f32 %v607_v22, %v559_v21  ;;  %1487 = verf.f32 %v583_v26  ;;  %v610_v39 = vadd.f32 1.0, %v1470_v25  ;;  %v884_v21 = vld [vmem:[%s1888_s20 + $0xe0] sm:$0xff]  ;;  %v883_v22 = vld [vmem:[%s1888_s20 + $0xd8] sm:$0xff]  ;;  %901 = vmatpush1.msra.mxu0 %v886_v18  ;;  %1338 = vmatprep.subr.mxu1 %v885_v20  ;;  %v873_v17 = vld [vmem:[%s1888_s20 + $0x88] sm:$0xff] }
 0x157   : > { %v1472_v29 = vpop.eup %1471  ;;  %1489 = verf.f32 %v572_v30  ;;  %902 = vmatprep.subr.mxu0 %v885_v20  ;;  %1354 = vmatpush1.msra.mxu1 %v884_v21  ;;  %v880_v25 = vld [vmem:[%s1888_s20 + $0xc0] sm:$0xff] }
 0x158   : > { %645 = vadd.xlane.f32.xlu1 %v1949_v27  ;;  %v609_v34 = vadd.f32 1.0, %v1472_v29  ;;  %643 = vadd.xlane.f32.xlu0 %v1952_v31  ;;  %1491 = verf.f32 %v584_v35  ;;  %v1965_v46 = vmul.f32 %v610_v39, %v562_v42 }
 0x159   : > { %v1474_v36 = vpop.eup %1473  ;;  %903 = vmatpush1.msra.mxu0 %v884_v21  ;;  %1339 = vmatprep.subr.mxu1 %v883_v22 }
 0x15a   : > { %v1960_v38 = vmul.f32 %v609_v34, %v561_v33  ;;  %v612_v48 = vadd.f32 1.0, %v1474_v36  ;;  %904 = vmatprep.subr.mxu0 %v883_v22  ;;  %1355 = vmatpush1.msra.mxu1 %v882_v23 }
 0x15b   : > { %v1476_v40 = vpop.eup %1475  ;;  %905 = vmatpush1.msra.mxu0 %v882_v23  ;;  %1340 = vmatprep.subr.mxu1 %v881_v24 }
 0x15c   : > { %v1478_v41 = vpop.eup %1477  ;;  %647 = vadd.xlane.f32.xlu1 %v1958_v37  ;;  %v611_v44 = vadd.f32 1.0, %v1476_v40  ;;  %649 = vadd.xlane.f32.xlu0 %v1960_v38  ;;  %v1973_v53 = vmul.f32 %v612_v48, %v564_v52 }
 0x15d   : > { %v1480_v45 = vpop.eup %1479  ;;  %v601_v51 = vadd.f32 1.0, %v1478_v41  ;;  %906 = vmatprep.subr.mxu0 %v881_v24  ;;  %1356 = vmatpush1.msra.mxu1 %v880_v25 }
 0x15e   : > { %v1967_v47 = vmul.f32 %v611_v44, %v563_v43  ;;  %v602_v60 = vadd.f32 1.0, %v1480_v45  ;;  %907 = vmatpush1.msra.mxu0 %v880_v25  ;;  %v870_v25 = vld [vmem:[%s1888_s20 + $0x70] sm:$0xff] }
 0x15f   : > { %v1482_v49 = vpop.eup %1481  ;;  %v1975_v59 = vmul.f32 %v601_v51, %v553_v50 }
 0x160   : > { %651 = vadd.xlane.f32.xlu1 %v1965_v46  ;;  %653 = vadd.xlane.f32.xlu0 %v1967_v47  ;;  %v613_v55 = vadd.f32 1.0, %v1482_v49  ;;  %v1484_v56 = vpop.eup %1483  ;;  %v1984_v2 = vmul.f32 %v602_v60, %v554_v57 }
 0x161   : > { %v1486_v61 = vpop.eup %1485  ;;  %v614_v0 = vadd.f32 1.0, %v1484_v56 }
 0x162   : > { %v1982_v63 = vmul.f32 %v613_v55, %v565_v62  ;;  %v603_v5 = vadd.f32 1.0, %v1486_v61  ;;  %v879_v62 = vld [vmem:[%s1888_s20 + $0xb8] sm:$0xff] }
 0x163   : > { %v1488_v1 = vpop.eup %1487  ;;  %v1990_v8 = vmul.f32 %v614_v0, %v566_v54  ;;  %1341 = vmatprep.subr.mxu1 %v879_v62  ;;  %908 = vmatprep.subr.mxu0 %v879_v62  ;;  %v877_v0 = vld [vmem:[%s1888_s20 + $0xa8] sm:$0xff]  ;;  %v1703_v62 = vmov 0.0  }
 0x164   : > { %655 = vadd.xlane.f32.xlu1 %v1973_v53  ;;  %633 = vadd.xlane.f32.xlu0 %v1975_v59  ;;  %v1490_v7 = vpop.eup %1489  ;;  %v615_v3 = vadd.f32 1.0, %v1488_v1  ;;  %v1992_v10 = vmul.f32 %v603_v5, %v555_v4 }
 0x165   : > { %v1492_v9 = vpop.eup %1491  ;;  %v604_v11 = vadd.f32 1.0, %v1490_v7  ;;  %v876_v7 = vld [vmem:[%s1888_s20 + $0xa0] sm:$0xff]  ;;  %988 = vmatprep.mubr.f32.mxu1 %v1703_v62  ;;  %964 = vmatprep.mubr.f32.mxu0 %v1703_v62 }
 0x166   : > { %v1998_v13 = vmul.f32 %v615_v3, %v567_v58  ;;  %v616_v14 = vadd.f32 1.0, %v1492_v9 }
 0x167   : > { %v2000_v15 = vmul.f32 %v604_v11, %v556_v12  ;;  %v874_v12 = vld [vmem:[%s1888_s20 + $0x90] sm:$0xff] }
 0x168   : > { %657 = vadd.xlane.f32.xlu1 %v1982_v63  ;;  %635 = vadd.xlane.f32.xlu0 %v1984_v2  ;;  %v2004_v16 = vmul.f32 %v616_v14, %v568_v6 }
 0x16c   : > { %659 = vadd.xlane.f32.xlu1 %v1990_v8  ;;  %637 = vadd.xlane.f32.xlu0 %v1992_v10 }
 0x170   : > { %661 = vadd.xlane.f32.xlu1 %v1998_v13  ;;  %639 = vadd.xlane.f32.xlu0 %v2000_v15 }
 0x174   : > { %663 = vadd.xlane.f32.xlu1 %v2004_v16 }
 0x1dd   : > { %v642_v26 = vpop.xlane.xlu0 %641 }
 0x1de   : > { %v670_v28 = vmul.f32 0.0078125, %v642_v26 }
 0x1e0   : > { %v2016_v29 = vsub.f32 %v1942_v19, %v670_v28 }
 0x1e1   : > { %v646_v30 = vpop.xlane.xlu1 %645  ;;  %v644_v33 = vpop.xlane.xlu0 %643 }
 0x1e2   : > { %v672_v32 = vmul.f32 0.0078125, %v646_v30  ;;  %v671_v34 = vmul.f32 0.0078125, %v644_v33  ;;  %v702_v35 = vmul.f32 %v2016_v29, %v2016_v29  ;;  %v869_v30 = vld [vmem:[%s1888_s20 + $0x68] sm:$0xff] }
 0x1e4   : > { %v2021_v36 = vsub.f32 %v1949_v27, %v672_v32  ;;  %v2024_v39 = vsub.f32 %v1952_v31, %v671_v34  ;;  %722 = vadd.xlane.f32.xlu0 %v702_v35 }
 0x1e5   : > { %v648_v40 = vpop.xlane.xlu1 %647  ;;  %v650_v42 = vpop.xlane.xlu0 %649 }
 0x1e6   : > { %v673_v41 = vmul.f32 0.0078125, %v648_v40  ;;  %v704_v19 = vmul.f32 %v2021_v36, %v2021_v36  ;;  %v674_v43 = vmul.f32 0.0078125, %v650_v42  ;;  %v703_v44 = vmul.f32 %v2024_v39, %v2024_v39 }
 0x1e8   : > { %v2031_v45 = vsub.f32 %v1958_v37, %v673_v41  ;;  %v2034_v27 = vsub.f32 %v1960_v38, %v674_v43  ;;  %724 = vadd.xlane.f32.xlu1 %v703_v44  ;;  %726 = vadd.xlane.f32.xlu0 %v704_v19  ;;  %v867_v41 = vld [vmem:[%s1888_s20 + $0x58] sm:$0xff]  ;;  %v866_v43 = vld [vmem:[%s1888_s20 + $0x50] sm:$0xff] }
 0x1e9   : > { %v652_v31 = vpop.xlane.xlu1 %651  ;;  %v654_v49 = vpop.xlane.xlu0 %653 }
 0x1ea   : > { %v675_v48 = vmul.f32 0.0078125, %v652_v31  ;;  %v705_v51 = vmul.f32 %v2031_v45, %v2031_v45  ;;  %v676_v52 = vmul.f32 0.0078125, %v654_v49  ;;  %v706_v50 = vmul.f32 %v2034_v27, %v2034_v27  ;;  %v864_v49 = vld [vmem:[%s1888_s20 + $0x40] sm:$0xff] }
 0x1ec   : > { %v2041_v37 = vsub.f32 %v1965_v46, %v675_v48  ;;  %v2044_v38 = vsub.f32 %v1967_v47, %v676_v52  ;;  %728 = vadd.xlane.f32.xlu1 %v705_v51  ;;  %730 = vadd.xlane.f32.xlu0 %v706_v50  ;;  %v878_v46 = vld [vmem:[%s1888_s20 + $0xb0] sm:$0xff]  ;;  %v865_v48 = vld [vmem:[%s1888_s20 + $0x48] sm:$0xff]  ;;  %v863_v51 = vld [vmem:[%s1888_s20 + $0x38] sm:$0xff] }
 0x1ed   : > { %v656_v55 = vpop.xlane.xlu1 %655  ;;  %v634_v60 = vpop.xlane.xlu0 %633  ;;  %1357 = vmatpush1.msra.mxu1 %v878_v46  ;;  %909 = vmatpush1.msra.mxu0 %v878_v46  ;;  %v862_v50 = vld [vmem:[%s1888_s20 + $0x30] sm:$0xff] }
 0x1ee   : > { %v677_v56 = vmul.f32 0.0078125, %v656_v55  ;;  %v707_v61 = vmul.f32 %v2041_v37, %v2041_v37  ;;  %v666_v57 = vmul.f32 0.0078125, %v634_v60  ;;  %v708_v54 = vmul.f32 %v2044_v38, %v2044_v38  ;;  %1342 = vmatprep.subr.mxu1 %v877_v0  ;;  %910 = vmatprep.subr.mxu0 %v877_v0  ;;  %v861_v55 = vld [vmem:[%s1888_s20 + $0x28] sm:$0xff]  ;;  %v858_v60 = vld [vmem:[%s1888_s20 + $0x10] sm:$0xff] }
 0x1ef   : > { %1358 = vmatpush1.msra.mxu1 %v876_v7  ;;  %911 = vmatpush1.msra.mxu0 %v876_v7 }
 0x1f0   : > { %v2053_v47 = vsub.f32 %v1973_v53, %v677_v56  ;;  %v2057_v1 = vsub.f32 %v1975_v59, %v666_v57  ;;  %732 = vadd.xlane.f32.xlu1 %v707_v61  ;;  %734 = vadd.xlane.f32.xlu0 %v708_v54  ;;  %v875_v59 = vld [vmem:[%s1888_s20 + $0x98] sm:$0xff]  ;;  %v857_v61 = vld [vmem:[%s1888_s20 + $0x8] sm:$0xff]  ;;  %v856_v57 = vld [vmem:[%s1888_s20] sm:$0xff] }
 0x1f1   : > { %v658_v5 = vpop.xlane.xlu1 %657  ;;  %v636_v58 = vpop.xlane.xlu0 %635  ;;  %1343 = vmatprep.subr.mxu1 %v875_v59  ;;  %912 = vmatprep.subr.mxu0 %v875_v59  ;;  %v859_v56 = vld [vmem:[%s1888_s20 + $0x18] sm:$0xff] }
 0x1f2   : > { %v678_v4 = vmul.f32 0.0078125, %v658_v5  ;;  %v709_v3 = vmul.f32 %v2053_v47, %v2053_v47  ;;  %v667_v53 = vmul.f32 0.0078125, %v636_v58  ;;  %v698_v9 = vmul.f32 %v2057_v1, %v2057_v1  ;;  %1359 = vmatpush1.msra.mxu1 %v874_v12  ;;  %913 = vmatpush1.msra.mxu0 %v874_v12 }
 0x1f3   : > { %1344 = vmatprep.subr.mxu1 %v873_v17  ;;  %914 = vmatprep.subr.mxu0 %v873_v17 }
 0x1f4   : > { %v2066_v11 = vsub.f32 %v1982_v63, %v678_v4  ;;  %v2070_v6 = vsub.f32 %v1984_v2, %v667_v53  ;;  %736 = vadd.xlane.f32.xlu1 %v709_v3  ;;  %714 = vadd.xlane.f32.xlu0 %v698_v9  ;;  %v872_v63 = vld [vmem:[%s1888_s20 + $0x80] sm:$0xff]  ;;  %v871_v2 = vld [vmem:[%s1888_s20 + $0x78] sm:$0xff] }
 0x1f5   : > { %v660_v14 = vpop.xlane.xlu1 %659  ;;  %v638_v20 = vpop.xlane.xlu0 %637  ;;  %1360 = vmatpush1.msra.mxu1 %v872_v63  ;;  %915 = vmatpush1.msra.mxu0 %v872_v63 }
 0x1f6   : > { %v679_v18 = vmul.f32 0.0078125, %v660_v14  ;;  %v710_v21 = vmul.f32 %v2066_v11, %v2066_v11  ;;  %v668_v22 = vmul.f32 0.0078125, %v638_v20  ;;  %v699_v23 = vmul.f32 %v2070_v6, %v2070_v6  ;;  %1345 = vmatprep.subr.mxu1 %v871_v2  ;;  %916 = vmatprep.subr.mxu0 %v871_v2 }
 0x1f7   : > { %1361 = vmatpush1.msra.mxu1 %v870_v25  ;;  %917 = vmatpush1.msra.mxu0 %v870_v25 }
 0x1f8   : > { %v2080_v24 = vsub.f32 %v1990_v8, %v679_v18  ;;  %v2084_v26 = vsub.f32 %v1992_v10, %v668_v22  ;;  %738 = vadd.xlane.f32.xlu1 %v710_v21  ;;  %716 = vadd.xlane.f32.xlu0 %v699_v23  ;;  %v868_v10 = vld [vmem:[%s1888_s20 + $0x60] sm:$0xff] }
 0x1f9   : > { %v662_v28 = vpop.xlane.xlu1 %661  ;;  %v640_v33 = vpop.xlane.xlu0 %639  ;;  %1346 = vmatprep.subr.mxu1 %v869_v30  ;;  %918 = vmatprep.subr.mxu0 %v869_v30 }
 0x1fa   : > { %v680_v32 = vmul.f32 0.0078125, %v662_v28  ;;  %v711_v34 = vmul.f32 %v2080_v24, %v2080_v24  ;;  %v669_v8 = vmul.f32 0.0078125, %v640_v33  ;;  %v700_v35 = vmul.f32 %v2084_v26, %v2084_v26  ;;  %1362 = vmatpush1.msra.mxu1 %v868_v10  ;;  %919 = vmatpush1.msra.mxu0 %v868_v10  ;;  %v2124_v33 = vld [vmem:[%s2328_s3] ss:$0 sm:$0xff] }
 0x1fb   : > { %1347 = vmatprep.subr.mxu1 %v867_v41  ;;  %920 = vmatprep.subr.mxu0 %v867_v41 }
 0x1fc   : > { %v2093_v40 = vsub.f32 %v1998_v13, %v680_v32  ;;  %v2097_v42 = vsub.f32 %v2000_v15, %v669_v8  ;;  %740 = vadd.xlane.f32.xlu1 %v711_v34  ;;  %718 = vadd.xlane.f32.xlu0 %v700_v35 }
 0x1fd   : > { %v664_v19 = vpop.xlane.xlu1 %663  ;;  %1363 = vmatpush1.msra.mxu1 %v866_v43  ;;  %921 = vmatpush1.msra.mxu0 %v866_v43  ;;  %v2130_v43 = vld [vmem:[%s2329_s4] ss:$0 sm:$0xff] }
 0x1fe   : > { %v681_v44 = vmul.f32 0.0078125, %v664_v19  ;;  %v712_v31 = vmul.f32 %v2093_v40, %v2093_v40  ;;  %v701_v13 = vmul.f32 %v2097_v42, %v2097_v42  ;;  %1348 = vmatprep.subr.mxu1 %v865_v48  ;;  %922 = vmatprep.subr.mxu0 %v865_v48 }
 0x1ff   : > { %1364 = vmatpush1.msra.mxu1 %v864_v49  ;;  %923 = vmatpush1.msra.mxu0 %v864_v49 }
 0x200   : > { %v2106_v15 = vsub.f32 %v2004_v16, %v681_v44  ;;  %742 = vadd.xlane.f32.xlu1 %v712_v31  ;;  %720 = vadd.xlane.f32.xlu0 %v701_v13  ;;  %v860_v16 = vld [vmem:[%s1888_s20 + $0x20] sm:$0xff]  ;;  %s1605_s20 = scalar_lea.vmem %s2272_s8, 4096 }
 0x201   : > { %1349 = vmatprep.subr.mxu1 %v863_v51  ;;  %924 = vmatprep.subr.mxu0 %v863_v51  ;;  %p1606_p0 = scmp.ne.s32.totalorder %s2272_s8, %s1605_s20  ;;  %p1613_p1 = scmp.lt.s32.totalorder %s1611_s15, %s1605_s20 }
 0x202   : > { %v713_v52 = vmul.f32 %v2106_v15, %v2106_v15  ;;  %1365 = vmatpush1.msra.mxu1 %v862_v50  ;;  %925 = vmatpush1.msra.mxu0 %v862_v50 }
 0x203   : > { %1350 = vmatprep.subr.mxu1 %v861_v55  ;;  %926 = vmatprep.subr.mxu0 %v861_v55  ;;  %p1607_p6 = pnand %p1606_p0, %p2360_p4  ;;  %p1614_p10 = por %p1613_p1, %p1612_p5 }
 0x204   : > { %744 = vadd.xlane.f32.xlu1 %v713_v52  ;;  %1366 = vmatpush1.msra.mxu1 %v860_v16 }
 0x205   : > { %1351 = vmatprep.subr.mxu1 %v859_v56  ;;  %927 = vmatpush1.msra.mxu0 %v860_v16  ;;  %p1608_p13 = pneg %p1607_p6 }
 0x206   : > { %1367 = vmatpush1.msra.mxu1 %v858_v60  ;;  %928 = vmatprep.subr.mxu0 %v859_v56 }
 0x207   : > { %1352 = vmatprep.subr.mxu1 %v857_v61  ;;  %929 = vmatpush1.msra.mxu0 %v858_v60  ;;  %p1615_p11 = pnand %p1614_p10, %p1608_p13 }
 0x208   : > { %1368 = vmatpush1.msra.mxu1 %v856_v57  ;;  %930 = vmatprep.subr.mxu0 %v857_v61 }
 0x209   : > { %931 = vmatpush1.msra.mxu0 %v856_v57 }
 0x26d   : > { %v723_v54 = vpop.xlane.xlu0 %722 }
 0x26e   : > { %v750_v46 = vmul.f32 0.0078125, %v723_v54 }
 0x270   : > { %v766_v0 = vadd.f32 1e-05, %v750_v46 }
 0x271   : > { %v725_v5 = vpop.xlane.xlu1 %724  ;;  %v727_v7 = vpop.xlane.xlu0 %726 }
 0x272   : > { %1493 = vrsqrt.f32 %v766_v0  ;;  %v751_v4 = vmul.f32 0.0078125, %v725_v5  ;;  %v752_v58 = vmul.f32 0.0078125, %v727_v7 }
 0x274   : > { %v767_v3 = vadd.f32 1e-05, %v751_v4  ;;  %v768_v53 = vadd.f32 1e-05, %v752_v58 }
 0x275   : > { %v729_v9 = vpop.xlane.xlu1 %728  ;;  %v731_v59 = vpop.xlane.xlu0 %730 }
 0x276   : > { %1495 = vrsqrt.f32 %v767_v3  ;;  %v753_v12 = vmul.f32 0.0078125, %v729_v9  ;;  %v754_v14 = vmul.f32 0.0078125, %v731_v59 }
 0x277   : > { %1497 = vrsqrt.f32 %v768_v53 }
 0x278   : > { %v769_v17 = vadd.f32 1e-05, %v753_v12  ;;  %v770_v18 = vadd.f32 1e-05, %v754_v14 }
 0x279   : > { %v733_v20 = vpop.xlane.xlu1 %732  ;;  %v735_v21 = vpop.xlane.xlu0 %734 }
 0x27a   : > { %1499 = vrsqrt.f32 %v769_v17  ;;  %v755_v63 = vmul.f32 0.0078125, %v733_v20  ;;  %v756_v23 = vmul.f32 0.0078125, %v735_v21 }
 0x27b   : > { %1501 = vrsqrt.f32 %v770_v18 }
 0x27c   : > { %v771_v22 = vadd.f32 1e-05, %v755_v63  ;;  %v772_v34 = vadd.f32 1e-05, %v756_v23 }
 0x27d   : > { %v737_v2 = vpop.xlane.xlu1 %736  ;;  %v715_v25 = vpop.xlane.xlu0 %714 }
 0x27e   : > { %v757_v28 = vmul.f32 0.0078125, %v737_v2  ;;  %v746_v30 = vmul.f32 0.0078125, %v715_v25  ;;  %1503 = vrsqrt.f32 %v771_v22 }
 0x27f   : > { %v1494_v32 = vpop.eup %1493 }
 0x280   : > { %v762_v8 = vadd.f32 1e-05, %v746_v30  ;;  %v798_v35 = vmul.f32 %v1494_v32, %v2016_v29  ;;  %v773_v10 = vadd.f32 1e-05, %v757_v28 }
 0x281   : > { %v739_v41 = vpop.xlane.xlu1 %738  ;;  %v717_v19 = vpop.xlane.xlu0 %716 }
 0x282   : > { %v758_v44 = vmul.f32 0.0078125, %v739_v41  ;;  %v747_v31 = vmul.f32 0.0078125, %v717_v19  ;;  %v821_v13 = vmul.f32 %v2124_v33, %v798_v35  ;;  %1505 = vrsqrt.f32 %v762_v8 }
 0x283   : > { %v1496_v48 = vpop.eup %1495  ;;  %1507 = vrsqrt.f32 %v772_v34 }
 0x284   : > { %v1498_v49 = vpop.eup %1497  ;;  %v763_v51 = vadd.f32 1e-05, %v747_v31  ;;  %v844_v52 = vadd.f32 %v2130_v43, %v821_v13  ;;  %v799_v29 = vmul.f32 %v1496_v48, %v2024_v39  ;;  %1509 = vrsqrt.f32 %v773_v10 }
 0x285   : > { %v741_v50 = vpop.xlane.xlu1 %740  ;;  %v719_v55 = vpop.xlane.xlu0 %718  ;;  %v800_v16 = vmul.f32 %v1498_v49, %v2021_v36  ;;  %v774_v56 = vadd.f32 1e-05, %v758_v44 }
 0x286   : > { %v759_v60 = vmul.f32 0.0078125, %v741_v50  ;;  %v748_v61 = vmul.f32 0.0078125, %v719_v55  ;;  %989 = vmatmul.mubr.f32.vlgmr.msra.gmra.mxu1 %v844_v52  ;;  %v822_v57 = vmul.f32 %v2124_v33, %v799_v29  ;;  %1511 = vrsqrt.f32 %v763_v51 }
 0x287   : > { %v1500_v54 = vpop.eup %1499  ;;  %994 = vmatprep.mubr.f32.mxu1 %v1703_v62  ;;  %v823_v39 = vmul.f32 %v2124_v33, %v800_v16  ;;  %1513 = vrsqrt.f32 %v774_v56 }
 0x288   : > { %v1502_v46 = vpop.eup %1501  ;;  %v764_v0 = vadd.f32 1e-05, %v748_v61  ;;  %v845_v5 = vadd.f32 %v2130_v43, %v822_v57  ;;  %v801_v7 = vmul.f32 %v1500_v54, %v2031_v45  ;;  %v775_v58 = vadd.f32 1e-05, %v759_v60 }
 0x289   : > { %v743_v4 = vpop.xlane.xlu1 %742  ;;  %v721_v36 = vpop.xlane.xlu0 %720  ;;  %v802_v53 = vmul.f32 %v1502_v46, %v2034_v27  ;;  %v846_v12 = vadd.f32 %v2130_v43, %v823_v39 }
 0x28a   : > { %v749_v3 = vmul.f32 0.0078125, %v721_v36  ;;  %995 = vmatmul.mubr.f32.gmra.mxu1 %v845_v5  ;;  %1515 = vrsqrt.f32 %v764_v0  ;;  %v760_v9 = vmul.f32 0.0078125, %v743_v4  ;;  %v824_v14 = vmul.f32 %v2124_v33, %v801_v7 }
 0x28b   : > { %1000 = vmatprep.mubr.f32.mxu1 %v1703_v62  ;;  %v1504_v17 = vpop.eup %1503  ;;  %1517 = vrsqrt.f32 %v775_v58  ;;  %v825_v45 = vmul.f32 %v2124_v33, %v802_v53  ;;  %v890_v4 = vlaneseq  ;;  %v888_v58 = vld [vmem:[%s365_s9] sm:$0x3] }
 0x28c   : > { %v765_v59 = vadd.f32 1e-05, %v749_v3  ;;  %v776_v21 = vadd.f32 1e-05, %v760_v9  ;;  %v847_v27 = vadd.f32 %v2130_v43, %v824_v14  ;;  %v803_v22 = vmul.f32 %v1504_v17, %v2041_v37 }
 0x28d   : > { %v745_v18 = vpop.xlane.xlu1 %744  ;;  %v848_v30 = vadd.f32 %v2130_v43, %v825_v45  ;;  %v891_v36 = vshrl.u32 %v890_v4, 7 }
 0x28e   : > { %1001 = vmatmul.mubr.f32.gmra.mxu1 %v846_v12  ;;  %1519 = vrsqrt.f32 %v765_v59  ;;  %v761_v63 = vmul.f32 0.0078125, %v745_v18  ;;  %v826_v8 = vmul.f32 %v2124_v33, %v803_v22 }
 0x28f   : > { %1006 = vmatprep.mubr.f32.mxu1 %v1703_v62  ;;  %v1506_v20 = vpop.eup %1505  ;;  %1521 = vrsqrt.f32 %v776_v21  ;;  %v896_v3 = vsub.s32 1, %v891_v36 }
 0x290   : > { %v1508_v23 = vpop.eup %1507  ;;  %v794_v2 = vmul.f32 %v1506_v20, %v2057_v1  ;;  %v777_v34 = vadd.f32 1e-05, %v761_v63  ;;  %v849_v44 = vadd.f32 %v2130_v43, %v826_v8 }
 0x291   : > { %v1510_v25 = vpop.eup %1509  ;;  %v804_v35 = vmul.f32 %v1508_v23, %v2044_v38  ;;  %v2199_v53 = vrot.slane %v888_v58, %v896_v3 }
 0x292   : > { %1007 = vmatmul.mubr.f32.gmra.mxu1 %v847_v27  ;;  %v817_v28 = vmul.f32 %v2124_v33, %v794_v2  ;;  %1523 = vrsqrt.f32 %v777_v34  ;;  %v805_v38 = vmul.f32 %v1510_v25, %v2053_v47 }
 0x293   : > { %1012 = vmatprep.mubr.f32.mxu1 %v1703_v62  ;;  %v1512_v32 = vpop.eup %1511  ;;  %v827_v31 = vmul.f32 %v2124_v33, %v804_v35 }
 0x294   : > { %v840_v37 = vadd.f32 %v2130_v43, %v817_v28  ;;  %v795_v10 = vmul.f32 %v1512_v32, %v2070_v6  ;;  %v1514_v1 = vpop.eup %1513  ;;  %v828_v29 = vmul.f32 %v2124_v33, %v805_v38 }
 0x295   : > { %v850_v52 = vadd.f32 %v2130_v43, %v827_v31  ;;  %v806_v47 = vmul.f32 %v1514_v1, %v2066_v11 }
 0x296   : > { %1013 = vmatmul.mubr.f32.gmra.mxu1 %v848_v30  ;;  %965 = vmatmul.mubr.f32.vlgmr.msra.gmra.mxu0 %v840_v37  ;;  %v818_v41 = vmul.f32 %v2124_v33, %v795_v10  ;;  %v851_v16 = vadd.f32 %v2130_v43, %v828_v29 }
 0x297   : > { %1018 = vmatprep.mubr.f32.mxu1 %v1703_v62  ;;  %v1516_v19 = vpop.eup %1515  ;;  %970 = vmatprep.mubr.f32.mxu0 %v1703_v62  ;;  %v829_v56 = vmul.f32 %v2124_v33, %v806_v47 }
 0x298   : > { %v841_v13 = vadd.f32 %v2130_v43, %v818_v41  ;;  %v796_v6 = vmul.f32 %v1516_v19, %v2084_v26  ;;  %v1518_v48 = vpop.eup %1517 }
 0x299   : > { %v807_v60 = vmul.f32 %v1518_v48, %v2080_v24 }
 0x29a   : > { %1019 = vmatmul.mubr.f32.gmra.mxu1 %v849_v44  ;;  %971 = vmatmul.mubr.f32.gmra.mxu0 %v841_v13  ;;  %v819_v49 = vmul.f32 %v2124_v33, %v796_v6 }
 0x29b   : > { %1024 = vmatprep.mubr.f32.mxu1 %v1703_v62  ;;  %v1520_v51 = vpop.eup %1519  ;;  %976 = vmatprep.mubr.f32.mxu0 %v1703_v62  ;;  %v830_v57 = vmul.f32 %v2124_v33, %v807_v60 }
 0x29c   : > { %v842_v50 = vadd.f32 %v2130_v43, %v819_v49  ;;  %v797_v26 = vmul.f32 %v1520_v51, %v2097_v42  ;;  %v1522_v61 = vpop.eup %1521  ;;  %v852_v42 = vadd.f32 %v2130_v43, %v829_v56 }
 0x29d   : > { %v808_v54 = vmul.f32 %v1522_v61, %v2093_v40  ;;  %v853_v24 = vadd.f32 %v2130_v43, %v830_v57 }
 0x29e   : > { %1025 = vmatmul.mubr.f32.gmra.mxu1 %v850_v52  ;;  %977 = vmatmul.mubr.f32.gmra.mxu0 %v842_v50  ;;  %v820_v55 = vmul.f32 %v2124_v33, %v797_v26 }
 0x29f   : > { %1030 = vmatprep.mubr.f32.mxu1 %v1703_v62  ;;  %982 = vmatprep.mubr.f32.mxu0 %v1703_v62  ;;  %v1524_v46 = vpop.eup %1523  ;;  %v831_v0 = vmul.f32 %v2124_v33, %v808_v54 }
 0x2a0   : > { %v843_v11 = vadd.f32 %v2130_v43, %v820_v55  ;;  %v809_v5 = vmul.f32 %v1524_v46, %v2106_v15  ;;  %v892_v15 = vsub.s32 0, %v891_v36 }
 0x2a1   : > { %v854_v39 = vadd.f32 %v2130_v43, %v831_v0 }
 0x2a2   : > { %1031 = vmatmul.mubr.f32.gmra.mxu1 %v851_v16  ;;  %983 = vmatmul.mubr.f32.gmra.mxu0 %v843_v11  ;;  %v832_v7 = vmul.f32 %v2124_v33, %v809_v5  ;;  %v2197_v33 = vrot.slane %v888_v58, %v892_v15 }
 0x2a3   : > { %1036 = vmatprep.mubr.f32.mxu1 %v1703_v62 }
 0x2a4   : > { %v855_v40 = vadd.f32 %v2130_v43, %v832_v7 }
 0x2a6   : > { %1037 = vmatmul.mubr.f32.gmra.mxu1 %v852_v42 }
 0x2a7   : > { %1042 = vmatprep.mubr.f32.mxu1 %v1703_v62 }
 0x2aa   : > { %1043 = vmatmul.mubr.f32.gmra.mxu1 %v853_v24 }
 0x2ab   : > { %1048 = vmatprep.mubr.f32.mxu1 %v1703_v62 }
 0x2ae   : > { %1049 = vmatmul.mubr.f32.gmra.mxu1 %v854_v39 }
 0x2af   : > { %1054 = vmatprep.mubr.f32.mxu1 %v1703_v62 }
 0x2b2   : > { %1055 = vmatmul.mubr.f32.gmra.mxu1 %v855_v40 }
 0x346   : > { %v990_v62 = vpop.f32.mrf.mxu1 }
 0x347   : > { %v991_v43 = vadd.f32 %v990_v62, %v2197_v33 }
 0x348   : > { %v992_v9 = vpop.f32.mrf.mxu1 }
 0x349   : > { %1069 = vst [vmem:[%s2203_s0 + $0x40] sm:$0xff] %v991_v43  ;;  %v993_v59 = vadd.f32 %v992_v9, %v2199_v53 }
 0x34a   : > { %v996_v12 = vpop.f32.mrf.mxu1 }
 0x34b   : > { %1070 = vst [vmem:[%s2203_s0 + $0x48] sm:$0xff] %v993_v59  ;;  %v997_v14 = vadd.f32 %v996_v12, %v2197_v33 }
 0x34c   : > { %v998_v17 = vpop.f32.mrf.mxu1 }
 0x34d   : > { %1071 = vst [vmem:[%s2203_s0 + $0x50] sm:$0xff] %v997_v14  ;;  %v999_v18 = vadd.f32 %v998_v17, %v2199_v53 }
 0x34e   : > { %v1002_v45 = vpop.f32.mrf.mxu1 }
 0x34f   : > { %1072 = vst [vmem:[%s2203_s0 + $0x58] sm:$0xff] %v999_v18  ;;  %v1003_v20 = vadd.f32 %v1002_v45, %v2197_v33 }
 0x350   : > { %v1004_v21 = vpop.f32.mrf.mxu1 }
 0x351   : > { %1073 = vst [vmem:[%s2203_s0 + $0x60] sm:$0xff] %v1003_v20  ;;  %v1005_v63 = vadd.f32 %v1004_v21, %v2199_v53 }
 0x352   : > { %v1008_v27 = vpop.f32.mrf.mxu1 }
 0x353   : > { %1074 = vst [vmem:[%s2203_s0 + $0x68] sm:$0xff] %v1005_v63  ;;  %v1009_v22 = vadd.f32 %v1008_v27, %v2197_v33 }
 0x354   : > { %v1010_v23 = vpop.f32.mrf.mxu1 }
 0x355   : > { %1075 = vst [vmem:[%s2203_s0 + $0x70] sm:$0xff] %v1009_v22  ;;  %v1011_v2 = vadd.f32 %v1010_v23, %v2199_v53 }
 0x356   : > { %v1014_v25 = vpop.f32.mrf.mxu1  ;;  %v966_v28 = vpop.f32.mrf.mxu0 }
 0x357   : > { %1076 = vst [vmem:[%s2203_s0 + $0x78] sm:$0xff] %v1011_v2  ;;  %v1015_v30 = vadd.f32 %v1014_v25, %v2197_v33  ;;  %v967_v32 = vadd.f32 %v966_v28, %v2197_v33 }
 0x358   : > { %v1016_v34 = vpop.f32.mrf.mxu1  ;;  %v968_v8 = vpop.f32.mrf.mxu0 }
 0x359   : > { %1077 = vst [vmem:[%s2203_s0 + $0x80] sm:$0xff] %v1015_v30  ;;  %v1017_v35 = vadd.f32 %v1016_v34, %v2199_v53  ;;  %1061 = vst [vmem:[%s2203_s0] sm:$0xff] %v967_v32  ;;  %v969_v37 = vadd.f32 %v968_v8, %v2199_v53 }
 0x35a   : > { %v1020_v10 = vpop.f32.mrf.mxu1  ;;  %v972_v1 = vpop.f32.mrf.mxu0 }
 0x35b   : > { %1078 = vst [vmem:[%s2203_s0 + $0x88] sm:$0xff] %v1017_v35  ;;  %v1021_v41 = vadd.f32 %v1020_v10, %v2197_v33  ;;  %1062 = vst [vmem:[%s2203_s0 + $0x8] sm:$0xff] %v969_v37  ;;  %v973_v19 = vadd.f32 %v972_v1, %v2197_v33 }
 0x35c   : > { %v1022_v44 = vpop.f32.mrf.mxu1  ;;  %v974_v31 = vpop.f32.mrf.mxu0 }
 0x35d   : > { %1079 = vst [vmem:[%s2203_s0 + $0x90] sm:$0xff] %v1021_v41  ;;  %v1023_v38 = vadd.f32 %v1022_v44, %v2199_v53  ;;  %1063 = vst [vmem:[%s2203_s0 + $0x10] sm:$0xff] %v973_v19  ;;  %v975_v13 = vadd.f32 %v974_v31, %v2199_v53 }
 0x35e   : > { %v1026_v6 = vpop.f32.mrf.mxu1  ;;  %v978_v48 = vpop.f32.mrf.mxu0 }
 0x35f   : > { %1080 = vst [vmem:[%s2203_s0 + $0x98] sm:$0xff] %v1023_v38  ;;  %v1027_v49 = vadd.f32 %v1026_v6, %v2197_v33  ;;  %1064 = vst [vmem:[%s2203_s0 + $0x18] sm:$0xff] %v975_v13  ;;  %v979_v51 = vadd.f32 %v978_v48, %v2197_v33 }
 0x360   : > { %v1028_v52 = vpop.f32.mrf.mxu1  ;;  %v980_v29 = vpop.f32.mrf.mxu0 }
 0x361   : > { %1081 = vst [vmem:[%s2203_s0 + $0xa0] sm:$0xff] %v1027_v49  ;;  %v1029_v47 = vadd.f32 %v1028_v52, %v2199_v53  ;;  %1065 = vst [vmem:[%s2203_s0 + $0x20] sm:$0xff] %v979_v51  ;;  %v981_v50 = vadd.f32 %v980_v29, %v2199_v53 }
 0x362   : > { %v1032_v26 = vpop.f32.mrf.mxu1  ;;  %v984_v55 = vpop.f32.mrf.mxu0 }
 0x363   : > { %1082 = vst [vmem:[%s2203_s0 + $0xa8] sm:$0xff] %v1029_v47  ;;  %v1033_v16 = vadd.f32 %v1032_v26, %v2197_v33  ;;  %1066 = vst [vmem:[%s2203_s0 + $0x28] sm:$0xff] %v981_v50  ;;  %v985_v56 = vadd.f32 %v984_v55, %v2197_v33 }
 0x364   : > { %v1034_v60 = vpop.f32.mrf.mxu1  ;;  %v986_v61 = vpop.f32.mrf.mxu0 }
 0x365   : > { %1083 = vst [vmem:[%s2203_s0 + $0xb0] sm:$0xff] %v1033_v16  ;;  %v1035_v11 = vadd.f32 %v1034_v60, %v2199_v53  ;;  %1067 = vst [vmem:[%s2203_s0 + $0x30] sm:$0xff] %v985_v56  ;;  %v987_v42 = vadd.f32 %v986_v61, %v2199_v53 }
 0x366   : > { %v1038_v57 = vpop.f32.mrf.mxu1 }
 0x367   : > { %1084 = vst [vmem:[%s2203_s0 + $0xb8] sm:$0xff] %v1035_v11  ;;  %v1039_v54 = vadd.f32 %v1038_v57, %v2197_v33  ;;  %1068 = vst [vmem:[%s2203_s0 + $0x38] sm:$0xff] %v987_v42 }
 0x368   : > { %v1040_v46 = vpop.f32.mrf.mxu1 }
 0x369   : > { %1085 = vst [vmem:[%s2203_s0 + $0xc0] sm:$0xff] %v1039_v54  ;;  %v1041_v24 = vadd.f32 %v1040_v46, %v2199_v53 }
 0x36a   : > { %v1044_v0 = vpop.f32.mrf.mxu1 }
 0x36b   : > { %1086 = vst [vmem:[%s2203_s0 + $0xc8] sm:$0xff] %v1041_v24  ;;  %v1045_v5 = vadd.f32 %v1044_v0, %v2197_v33 }
 0x36c   : > { %v1046_v39 = vpop.f32.mrf.mxu1 }
 0x36d   : > { %1087 = vst [vmem:[%s2203_s0 + $0xd0] sm:$0xff] %v1045_v5  ;;  %v1047_v7 = vadd.f32 %v1046_v39, %v2199_v53 }
 0x36e   : > { %v1050_v40 = vpop.f32.mrf.mxu1 }
 0x36f   : > { %1088 = vst [vmem:[%s2203_s0 + $0xd8] sm:$0xff] %v1047_v7  ;;  %v1051_v4 = vadd.f32 %v1050_v40, %v2197_v33 }
 0x370   : > { %v1052_v36 = vpop.f32.mrf.mxu1 }
 0x371   : > { %1089 = vst [vmem:[%s2203_s0 + $0xe0] sm:$0xff] %v1051_v4  ;;  %v1053_v15 = vadd.f32 %v1052_v36, %v2199_v53 }
 0x372   : > { %v1056_v58 = vpop.f32.mrf.mxu1 }
 0x373   : > { %1090 = vst [vmem:[%s2203_s0 + $0xe8] sm:$0xff] %v1053_v15  ;;  %v1057_v3 = vadd.f32 %v1056_v58, %v2197_v33 }
 0x374   : > { %v1058_v62 = vpop.f32.mrf.mxu1 }
 0x375   : > { %1091 = vst [vmem:[%s2203_s0 + $0xf0] sm:$0xff] %v1057_v3  ;;  %v1059_v43 = vadd.f32 %v1058_v62, %v2199_v53 }
 0x377   : > { %1092 = vst [vmem:[%s2203_s0 + $0xf8] sm:$0xff] %v1059_v43 }
 0x378   : > { %1618 = shalt.err (!%p1615_p11)
}
 0x379   : > { %s1619_s24 = scalar_lea.hbm %s2270_s14, 4096  ;;  %s1623_s21 = scalar_lea.hbm %s2332_s7, 8192 }
 0x37a   : > { %p1620_p3 = scmp.ne.s32.totalorder %s2270_s14, %s1619_s24  ;;  %p1624_p7 = scmp.lt.s32.totalorder %s2270_s14, %s2332_s7 }
 0x37b   : > { %p1625_p12 = scmp.lt.s32.totalorder %s1623_s21, %s1619_s24 }
 0x37c   : > { %p1621_p9 = pnand %p1620_p3, %p2360_p4 }
 0x37d   : > { %p1626_p2 = por %p1625_p12, %p1624_p7 }
 0x37e   : > { %p1622_p8 = pneg %p1621_p9 }
 0x380   : > { %p1627_p0 = pnand %p1626_p2, %p1622_p8 }
 0x382   : > { %1630 = shalt.err (!%p1627_p0)
}
 0x383   : > { %s1705_s10 = smov 256   ;;  %s1706_s9 = smov 512  }
 0x384   : > { %s1707_s0 = smov 16  }
 0x385   : > { %1379 = dma.vmem_to_hbm [thread:$0]  (%p2360_p4), %s2272_s8, 4096, %s2270_s14, %s2279_s27, %s1705_s10, %s1706_s9, %s1707_s0  }
 0x386 PF: > { %s2361_s13 = sld [smem:[#allocation13_spill]] }
 0x387   : > { %s2362_s1 = sld [smem:[#allocation15_spill]] }
 0x388   : > { %s2363_s29 = sld [smem:[#allocation14_spill]] }
 0x38c   : > { %s1125_s20 = sand.u32 1, %s2361_s13  }
 0x38d   : > { %p2364_p6 = scmp.ne.s32.totalorder %s2362_s1, 0  ;;  %s1126_s30 = scalar_lea.sflag [#allocation4], %s1125_s20 }
 0x38e   : > { %p2365_p13 = scmp.ge.s32.totalorder %s2363_s29, 2 }
 0x390   : > { %p1393_p5 = pnand %p2365_p13, %p2364_p6 }
 0x392   : > { %p1394_p1 = pneg %p1393_p5 }
 0x394   : > { %1668 = dma.done.wait (%p1394_p1), %s1126_s30, 4096  }
 0x395   : > { %1670 = vsyncadd (%p1394_p1), %s1126_s30, 4294963200  ;;  %s22_s29 = sadd.s32 1, %s2363_s29   ;;  %s2366_s24 = smov %s1677_s25 }
 0x396   : > { %p19_p10 = scmp.ge.s32.totalorder %s22_s29, 4   ;;  %s2367_s25 = smov %s1681_s26 }
 0x397   : > { %s2368_s26 = smov %s1864_s22  ;;  %s2369_s27 = smov %s1689_s28 }
 0x398   : > { %s2370_s28 = smov %s2372_s16  ;;  %21 = sbr.rel (!%p19_p10) target bundleno = 9 (0x9), region = 104 }
 0x39d   :  { %1131 = vsyncpa [#allocation3], 1 }
 0x39e   :  { %1133 = vsyncpa [#allocation3 + $0x1], 1 }
 0x39f   :  { %1134 = vsyncpa [#allocation6], 1 }
 0x3a0   :  { %1135 = vsyncpa [#allocation4], 1 }
 0x3a1   :  { %1137 = vsyncpa [#allocation4 + $0x1], 1 }

</bundles_post_ra>
